<compile_context>
chip_gen: v6e
topology: v6e:2x2x1
jax: 0.10.0
libtpu: 0.0.40
codegen_flags: <defaults>
</compile_context>

<pallas_src>
import jax
import jax.numpy as jnp
from jax.experimental import pallas as pl
from jax.experimental.pallas import tpu as pltpu

KSIZE = 7
PAD = 3


def _round_up(n, m):
    return (n + m - 1) // m * m


def _conv_as_dense_matrices(conv_w, H, W):
    """Fold Conv2d(2, 1, 7, padding=3) weights into two (H*W, H*W) matrices.

    conv_out_flat[p] = sum_q avg_flat[q] * K_avg[q, p]
                     + sum_q max_flat[q] * K_max[q, p]
    with rows q = i_in*W + j_in and cols p = i_out*W + j_out.
    """
    w = conv_w.astype(jnp.float32)                                   # (1, 2, 7, 7)
    dy = jnp.arange(H)[:, None] - jnp.arange(H)[None, :] + PAD       # (H_in, H_out)
    dx = jnp.arange(W)[:, None] - jnp.arange(W)[None, :] + PAD       # (W_in, W_out)
    vy = (dy >= 0) & (dy < KSIZE)
    vx = (dx >= 0) & (dx < KSIZE)
    dyc = jnp.clip(dy, 0, KSIZE - 1)
    dxc = jnp.clip(dx, 0, KSIZE - 1)
    valid = vy[:, :, None, None] & vx[None, None, :, :]              # (H,H,W,W)
    mats = []
    for c in range(2):
        wc = w[0, c]                                                  # (7, 7)
        m = wc[dyc[:, :, None, None], dxc[None, None, :, :]]          # (H_in,H_out,W_in,W_out)
        m = jnp.where(valid, m, 0.0)
        # reorder to (i_in, j_in, i_out, j_out) then flatten
        mats.append(jnp.transpose(m, (0, 2, 1, 3)).reshape(H * W, H * W))
    return mats[0], mats[1]


def _spatial_attention_kernel(b_ref, x_ref, k_ref, o_ref):
    # b_ref: SMEM (1,)            conv bias
    # x_ref: VMEM (nb, C, HWp)    input chunk, native dtype
    # k_ref: VMEM (2*HWp, HWp)    fused dense conv matrix (avg rows, then max rows)
    # o_ref: VMEM (nb, C, HWp)
    x = x_ref[...]                                          # keep native dtype
    inv_c = 1.0 / x.shape[1]                                # static constant
    avg = jnp.sum(x, axis=1, dtype=jnp.float32) * inv_c     # (nb, HWp) f32 accumulation
    mx = jnp.max(x, axis=1).astype(jnp.float32)             # (nb, HWp) exact max, then cast
    maps = jnp.concatenate([avg, mx], axis=-1)              # (nb, 2*HWp)

    k = k_ref[...]
    conv = jnp.dot(maps.astype(k.dtype), k,                 # single fused MXU matmul
                   preferred_element_type=jnp.float32)
    attn = jax.nn.sigmoid(conv + b_ref[0])                  # (nb, HWp) on the EUP

    # Multiply in native dtype (no full-block f32 temp); lane-dense full store.
    o_ref[...] = (x * attn.astype(x.dtype)[:, None, :]).astype(o_ref.dtype)


def _vmem_budget_and_cores():
    """Return (usable VMEM cap in bytes, is_dual_tc_chip) — generation-aware."""
    phys = 128 * 2**20
    try:
        phys = int(pltpu.get_tpu_info().vmem_capacity_bytes)
    except Exception:
        pass
    if phys <= 64 * 2**20:
        # v7x-class: 64 MiB/TC physical, 2 TCs/chip -> leave headroom for
        # Mosaic internal scratch and padding; keep a parallel grid axis.
        return 52 * 2**20, True
    # v5e/v6e-class: 128 MiB, single TC -> allow much larger blocks.
    return min(phys - 24 * 2**20, 100 * 2**20), False


def spatial_attention(x, conv_w, conv_b, *, block_bytes_target=8 << 20):
    """x: (N, C, H, W); conv_w: (1, 2, 7, 7); conv_b: (1,)."""
    N, C, H, W = x.shape
    HW = H * W
    HWp = _round_up(HW, 128)                      # lane-dense (unmasked stores)
    itemsize = jnp.dtype(x.dtype).itemsize

    # --- fold conv weights into one fused (2*HWp, HWp) contraction matrix.
    k_dtype = jnp.float32 if HWp < 1024 else jnp.bfloat16   # halve K on big maps
    k_avg, k_max = _conv_as_dense_matrices(conv_w, H, W)     # (HW, HW) f32 each
    k_full = jnp.zeros((2 * HWp, HWp), jnp.float32)
    k_full = k_full.at[:HW, :HW].set(k_avg)
    k_full = k_full.at[HWp:HWp + HW, :HW].set(k_max)
    k_full = k_full.astype(k_dtype)
    bias = conv_b.reshape(1).astype(jnp.float32)

    # Lane-dense view; zero-pad H*W up to a multiple of 128 (padded lanes give
    # zero output and are sliced off afterwards).
    x_flat = x.reshape(N, C, HW)
    if HWp != HW:
        x_flat = jnp.pad(x_flat, ((0, 0), (0, 0), (0, HWp - HW)))

    # --- generation-aware VMEM cap / TensorCore count.
    vmem_cap, multi_tc = _vmem_budget_and_cores()

    # --- per-batch-element VMEM accounting (includes C sublane padding).
    sub_mult = 8 * max(1, 4 // itemsize)                  # 8 / 16 / 32 sublane tile
    c_pad = _round_up(C, sub_mult)
    per_item_blk = c_pad * HWp * itemsize                 # one buffer, one batch elem
    per_item_vmem = 4 * per_item_blk                      # in + out, double-buffered
    if itemsize < 4:
        per_item_vmem += _round_up(C, 8) * HWp * 4        # f32 accumulation temp
    k_bytes = 2 * HWp * HWp * jnp.dtype(k_dtype).itemsize
    fixed = 2 * k_bytes + (3 << 20)                       # double-buffered K + scratch slack

    # --- batch chunk size: as large as the target / VMEM cap allow.
    nb_vmem = max(1, int((vmem_cap - fixed) // max(per_item_vmem, 1)))
    nb_tgt = max(1, int(block_bytes_target // max(per_item_blk, 1)))
    nb_want = max(1, min(N, nb_vmem, nb_tgt))
    if multi_tc and N >= 2:
        nb_want = min(nb_want, max(1, N // 2))            # keep >= 2 steps for dual-TC

    # Largest divisor of N not exceeding nb_want; if that collapses far below
    # the target (prime / awkward N), use a ragged last block instead.
    nb = 1
    for d in range(nb_want, 0, -1):
        if N % d == 0:
            nb = d
            break
    if 2 * nb < nb_want:
        nb = nb_want                                      # ragged last block
    grid = (pl.cdiv(N, nb),)

    vmem_need = fixed + nb * per_item_vmem
    vmem_limit = int(min(vmem_cap, max(vmem_need, 32 * 2**20)))

    cost = pl.CostEstimate(
        flops=int(2 * N * (2 * HWp) * HWp + 4 * N * C * HWp),
        transcendentals=int(N * HWp),
        bytes_accessed=int(2 * N * C * HWp * itemsize),
    )

    out_flat = pl.pallas_call(
        _spatial_attention_kernel,
        out_shape=jax.ShapeDtypeStruct((N, C, HWp), x_flat.dtype),
        grid=grid,
        in_specs=[
            pl.BlockSpec(memory_space=pltpu.MemorySpace.SMEM),     # bias (scalar)
            pl.BlockSpec((nb, C, HWp), lambda i: (i, 0, 0)),       # x chunk
            pl.BlockSpec((2 * HWp, HWp), lambda i: (0, 0)),        # fused K (constant)
        ],
        out_specs=pl.BlockSpec((nb, C, HWp), lambda i: (i, 0, 0)),
        compiler_params=pltpu.CompilerParams(
            dimension_semantics=("parallel",),
            vmem_limit_bytes=vmem_limit),
        cost_estimate=cost,
    )(bias, x_flat, k_full)

    out = out_flat[:, :, :HW] if HWp != HW else out_flat
    return out.reshape(N, C, H, W)


def _reference(x, conv_w, conv_b):
    """Pure-JAX reference mirroring the PyTorch module."""
    avg = jnp.mean(x, axis=1, keepdims=True)
    mx = jnp.max(x, axis=1, keepdims=True)
    stacked = jnp.concatenate([avg, mx], axis=1)              # (N, 2, H, W)
    out = jax.lax.conv_general_dilated(
        stacked, conv_w, window_strides=(1, 1),
        padding=((PAD, PAD), (PAD, PAD)),
        dimension_numbers=("NCHW", "OIHW", "NCHW"),
        precision=jax.lax.Precision.HIGHEST)
    out = out + conv_b.reshape(1, 1, 1, 1)
    return x * jax.nn.sigmoid(out)


if __name__ == "__main__":
    key = jax.random.PRNGKey(0)
    kx, kw, kb = jax.random.split(key, 3)

    N, C, H, W = 2, 4, 16, 16
    x = jax.random.normal(kx, (N, C, H, W), dtype=jnp.float32)

    # Deterministic synthetic conv parameters (Conv2d(2, 1, 7, padding=3))
    fan_in = 2 * KSIZE * KSIZE
    bound = 1.0 / (fan_in ** 0.5)
    conv_w = jax.random.uniform(kw, (1, 2, KSIZE, KSIZE),
                                minval=-bound, maxval=bound, dtype=jnp.float32)
    conv_b = jax.random.uniform(kb, (1,), minval=-bound, maxval=bound,
                                dtype=jnp.float32)

    out = spatial_attention(x, conv_w, conv_b)
    out = jax.block_until_ready(out)

    ref = _reference(x, conv_w, conv_b)
    assert out.shape == ref.shape
    # Tolerance leaves room for MXU f32 rounding in the in-kernel matmul.
    assert jnp.allclose(out, ref, atol=1e-4, rtol=1e-4), "mismatch vs reference"

    print("KERNEL_OK")
</pallas_src>

<mosaic_0001>
module attributes {stable_mosaic.version = 11 : i64} {
  func.func @_spatial_attention_kernel(%arg0: i32, %arg1: memref<1xf32, #tpu.memory_space<smem>>, %arg2: memref<2x4x256xf32, #tpu.memory_space<vmem>>, %arg3: memref<512x256xf32, #tpu.memory_space<vmem>>, %arg4: memref<2x4x256xf32, #tpu.memory_space<vmem>>) attributes {dimension_semantics = [#tpu.dimension_semantics<parallel>], iteration_bounds = array<i64: 1>, scalar_prefetch = 0 : i64, scratch_operands = 0 : i64, tpu.core_type = #tpu.core_type<tc>, window_params = [{transform_indices = @transform_0, window_bounds = array<i64: 1>}, {transform_indices = @transform_1, window_bounds = array<i64: 2, 4, 256>}, {pipeline_mode = #tpu.pipeline_mode<synchronous>, transform_indices = @transform_2, window_bounds = array<i64: 512, 256>}, {transform_indices = @transform_3, window_bounds = array<i64: 2, 4, 256>}]} {
    %c0 = arith.constant 0 : index
    %c0_0 = arith.constant 0 : index
    %c0_1 = arith.constant 0 : index
    %0 = vector.load %arg2[%c0, %c0_0, %c0_1] : memref<2x4x256xf32, #tpu.memory_space<vmem>>, vector<2x4x256xf32>
    %cst = arith.constant dense<0.000000e+00> : vector<2x256xf32>
    %1 = vector.multi_reduction <add>, %0, %cst [1] : vector<2x4x256xf32> to vector<2x256xf32>
    %cst_2 = arith.constant 2.500000e-01 : f32
    %2 = vector.broadcast %cst_2 : f32 to vector<2x256xf32>
    %3 = arith.mulf %1, %2 : vector<2x256xf32>
    %cst_3 = arith.constant dense<0xFF800000> : vector<2x256xf32>
    %4 = vector.multi_reduction <maximumf>, %0, %cst_3 [1] : vector<2x4x256xf32> to vector<2x256xf32>
    %5 = tpu.concatenate %3, %4 in 1 : vector<2x256xf32>, vector<2x256xf32> -> vector<2x512xf32>
    %c0_4 = arith.constant 0 : index
    %c0_5 = arith.constant 0 : index
    %6 = vector.load %arg3[%c0_4, %c0_5] : memref<512x256xf32, #tpu.memory_space<vmem>>, vector<512x256xf32>
    %cst_6 = arith.constant dense<0.000000e+00> : vector<2x256xf32>
    %7 = tpu.matmul %5, %6, %cst_6 {dimension_numbers = #tpu.dot_dimension_numbers<[1], [0], [0], [1], [0, 0, 1, 1], [], []>} : vector<2x512xf32>, vector<512x256xf32>, vector<2x256xf32> -> vector<2x256xf32>
    %c0_7 = arith.constant 0 : index
    %8 = memref.load %arg1[%c0_7] : memref<1xf32, #tpu.memory_space<smem>>
    %9 = vector.broadcast %8 : f32 to vector<2x256xf32>
    %10 = arith.addf %7, %9 : vector<2x256xf32>
    %11 = arith.negf %10 : vector<2x256xf32>
    %12 = math.exp %11 : vector<2x256xf32>
    %cst_8 = arith.constant 1.000000e+00 : f32
    %13 = vector.broadcast %cst_8 : f32 to vector<2x256xf32>
    %14 = arith.addf %13, %12 : vector<2x256xf32>
    %15 = arith.divf %13, %14 : vector<2x256xf32>
    %16 = vector.shape_cast %15 : vector<2x256xf32> to vector<2x1x256xf32>
    %17 = vector.broadcast %16 : vector<2x1x256xf32> to vector<2x4x256xf32>
    %18 = arith.mulf %0, %17 : vector<2x4x256xf32>
    %c0_9 = arith.constant 0 : index
    %c0_10 = arith.constant 0 : index
    %c0_11 = arith.constant 0 : index
    %19 = vector.load %arg4[%c0_9, %c0_10, %c0_11] : memref<2x4x256xf32, #tpu.memory_space<vmem>>, vector<2x4x256xf32>
    tpu.vector_store %arg4[%c0_9, %c0_10, %c0_11], %18 {strides = array<i32>} : memref<2x4x256xf32, #tpu.memory_space<vmem>>, vector<2x4x256xf32>,
    return
  }
  func.func @transform_0(%arg0: i32) -> i32 {
    %c0_i32 = arith.constant 0 : i32
    %c0_i32_0 = arith.constant 0 : i32
    return %c0_i32 : i32
  }
  func.func @transform_1(%arg0: i32) -> (i32, i32, i32) {
    %c0_i32 = arith.constant 0 : i32
    %c0_i32_0 = arith.constant 0 : i32
    %c0_i32_1 = arith.constant 0 : i32
    return %arg0, %c0_i32, %c0_i32_0 : i32, i32, i32
  }
  func.func @transform_2(%arg0: i32) -> (i32, i32) {
    %c0_i32 = arith.constant 0 : i32
    %c0_i32_0 = arith.constant 0 : i32
    %c0_i32_1 = arith.constant 0 : i32
    return %c0_i32, %c0_i32_0 : i32, i32
  }
  func.func @transform_3(%arg0: i32) -> (i32, i32, i32) {
    %c0_i32 = arith.constant 0 : i32
    %c0_i32_0 = arith.constant 0 : i32
    %c0_i32_1 = arith.constant 0 : i32
    return %arg0, %c0_i32, %c0_i32_0 : i32, i32, i32
  }
}

</mosaic_0001>

<bundles_post_ra>
// kernel: tpu_custom_call.1
= control target key start
LH: loop header
LB: loop body
LE: loop exit
PB: predicated region body
PF: predicated region fallthrough
CT: control target
= control target key end

     0   :  { %9 = vsyncpa [#allocation4], 0  ;;  %s639_s0 = inlined_call_operand.<no memory space> [shape: f32[1], index: 0, kind: input, shape index: {}]   ;;  %s640_s1 = inlined_call_operand.hbm [shape: f32[2,4,256], index: 1, kind: input, shape index: {}]   ;;  %s641_s2 = inlined_call_operand.hbm [shape: f32[512,256], index: 2, kind: input, shape index: {}]   ;;  %s642_s3 = inlined_call_operand.hbm [shape: f32[2,4,256], index: 3, kind: output, shape index: {}]  }
   0x1   :  { %10 = vsyncpa [#allocation7], 0 }
   0x2   :  { %11 = vsyncpa [#allocation5], 0  ;;  %s567_s12 = smov [#allocation3]  }
   0x3   :  { %s19_s13 = sshll.u32 %s567_s12, 4  ;;  %s20_s13 = int_to_ptr.vmem [resolvable:$true] %s19_s13 }
   0x4   :  { %s509_s14 = scalar_lea.vmem %s20_s13, 256  ;;  %p514_p1 = scmp.lt.s32.totalorder %s20_s13, %s20_s13 }
   0x5   :  { %p510_p0 = scmp.ne.s32.totalorder %s20_s13, %s509_s14  ;;  %p515_p2 = scmp.lt.s32.totalorder %s509_s14, %s509_s14 }
   0x7   :  { %p516_p3 = por %p515_p2, %p514_p1 }
   0x9   :  { %p517_p4 = pnand %p516_p3, %p510_p0 }
   0xb   :  { %520 = shalt.err (!%p517_p4)
}
   0xc   :  { %s568_s15 = smov 128   ;;  %s569_s16 = smov 8  }
   0xd   :  { %25 = dma.hbm_to_vmem [thread:$0]  %s640_s1, 256, %s20_s13, [#allocation4], %s568_s15, %s568_s15, %s569_s16  }
   0xe   :  { %s570_s19 = smov [#allocation6]  }
   0xf   :  { %s31_s20 = sshll.u32 %s570_s19, 4  ;;  %s32_s20 = int_to_ptr.vmem [resolvable:$true] %s31_s20 }
  0x10   :  { %s529_s21 = scalar_lea.vmem %s32_s20, 16384  ;;  %p534_p6 = scmp.lt.s32.totalorder %s32_s20, %s32_s20 }
  0x11   :  { %p530_p5 = scmp.ne.s32.totalorder %s32_s20, %s529_s21  ;;  %p535_p7 = scmp.lt.s32.totalorder %s529_s21, %s529_s21 }
  0x13   :  { %p536_p8 = por %p535_p7, %p534_p6 }
  0x15   :  { %p537_p9 = pnand %p536_p8, %p530_p5 }
  0x17   :  { %540 = shalt.err (!%p537_p9)
}
  0x18   :  { %s571_s22 = smov 256   ;;  %s572_s23 = smov 16  }
  0x19   :  { %37 = dma.hbm_to_vmem [thread:$0]  %s641_s2, 16384, %s32_s20, [#allocation7], %s571_s22, %s571_s22, %s572_s23  }
  0x1a   :  { %561 = dma.done.wait [#allocation4], 256  }
  0x1b   :  { %562 = vsyncadd [#allocation4], 4294967040 }
  0x1c   :  { %563 = dma.done.wait [#allocation7], 16384  }
  0x1d   :  { %564 = vsyncadd [#allocation7], 4294950912  ;;  %v161_v0 = vld [vmem:[#allocation6 + $0xf8] sm:$0xff]  ;;  %v160_v2 = vld [vmem:[#allocation6 + $0xf0] sm:$0xff]  ;;  %vm52_vm0 = vcmask 1043456   ;;  %vm117_vm1 = vcmask 1041409  }
  0x1e   :  { %v225_v1 = vld [vmem:[#allocation6 + $0x2f8] sm:$0xff]  ;;  %260 = vmatprep.subr.mxu0 %v161_v0  ;;  %v224_v3 = vld [vmem:[#allocation6 + $0x2f0] sm:$0xff]  ;;  %v159_v4 = vld [vmem:[#allocation6 + $0xe8] sm:$0xff] }
  0x1f   :  { %331 = vmatprep.subr.mxu1 %v225_v1  ;;  %v223_v5 = vld [vmem:[#allocation6 + $0x2e8] sm:$0xff]  ;;  %261 = vmatpush1.msra.mxu0 %v160_v2  ;;  %v158_v6 = vld [vmem:[#allocation6 + $0xe0] sm:$0xff]  ;;  %v157_v8 = vld [vmem:[#allocation6 + $0xd8] sm:$0xff] }
  0x20   :  { %332 = vmatpush1.msra.mxu1 %v224_v3  ;;  %v222_v7 = vld [vmem:[#allocation6 + $0x2e0] sm:$0xff]  ;;  %262 = vmatprep.subr.mxu0 %v159_v4  ;;  %v221_v9 = vld [vmem:[#allocation6 + $0x2d8] sm:$0xff]  ;;  %v156_v10 = vld [vmem:[#allocation6 + $0xd0] sm:$0xff] }
  0x21   :  { %333 = vmatprep.subr.mxu1 %v223_v5  ;;  %v220_v11 = vld [vmem:[#allocation6 + $0x2d0] sm:$0xff]  ;;  %263 = vmatpush1.msra.mxu0 %v158_v6  ;;  %v155_v12 = vld [vmem:[#allocation6 + $0xc8] sm:$0xff]  ;;  %v154_v14 = vld [vmem:[#allocation6 + $0xc0] sm:$0xff] }
  0x22   :  { %334 = vmatpush1.msra.mxu1 %v222_v7  ;;  %v219_v13 = vld [vmem:[#allocation6 + $0x2c8] sm:$0xff]  ;;  %264 = vmatprep.subr.mxu0 %v157_v8  ;;  %v218_v15 = vld [vmem:[#allocation6 + $0x2c0] sm:$0xff]  ;;  %v153_v16 = vld [vmem:[#allocation6 + $0xb8] sm:$0xff] }
  0x23   :  { %335 = vmatprep.subr.mxu1 %v221_v9  ;;  %265 = vmatpush1.msra.mxu0 %v156_v10  ;;  %v217_v17 = vld [vmem:[#allocation6 + $0x2b8] sm:$0xff]  ;;  %v152_v18 = vld [vmem:[#allocation6 + $0xb0] sm:$0xff]  ;;  %v151_v20 = vld [vmem:[#allocation6 + $0xa8] sm:$0xff] }
  0x24   :  { %336 = vmatpush1.msra.mxu1 %v220_v11  ;;  %266 = vmatprep.subr.mxu0 %v155_v12  ;;  %v216_v19 = vld [vmem:[#allocation6 + $0x2b0] sm:$0xff]  ;;  %v215_v21 = vld [vmem:[#allocation6 + $0x2a8] sm:$0xff]  ;;  %v150_v22 = vld [vmem:[#allocation6 + $0xa0] sm:$0xff] }
  0x25   :  { %337 = vmatprep.subr.mxu1 %v219_v13  ;;  %267 = vmatpush1.msra.mxu0 %v154_v14  ;;  %v214_v23 = vld [vmem:[#allocation6 + $0x2a0] sm:$0xff]  ;;  %v149_v24 = vld [vmem:[#allocation6 + $0x98] sm:$0xff]  ;;  %v148_v26 = vld [vmem:[#allocation6 + $0x90] sm:$0xff] }
  0x26   :  { %338 = vmatpush1.msra.mxu1 %v218_v15  ;;  %268 = vmatprep.subr.mxu0 %v153_v16  ;;  %v213_v25 = vld [vmem:[#allocation6 + $0x298] sm:$0xff]  ;;  %v212_v27 = vld [vmem:[#allocation6 + $0x290] sm:$0xff]  ;;  %v147_v28 = vld [vmem:[#allocation6 + $0x88] sm:$0xff] }
  0x27   :  { %339 = vmatprep.subr.mxu1 %v217_v17  ;;  %269 = vmatpush1.msra.mxu0 %v152_v18  ;;  %v211_v29 = vld [vmem:[#allocation6 + $0x288] sm:$0xff]  ;;  %v146_v30 = vld [vmem:[#allocation6 + $0x80] sm:$0xff]  ;;  %v145_v32 = vld [vmem:[#allocation6 + $0x78] sm:$0xff] }
  0x28   :  { %340 = vmatpush1.msra.mxu1 %v216_v19  ;;  %270 = vmatprep.subr.mxu0 %v151_v20  ;;  %v210_v31 = vld [vmem:[#allocation6 + $0x280] sm:$0xff]  ;;  %v209_v33 = vld [vmem:[#allocation6 + $0x278] sm:$0xff]  ;;  %v144_v34 = vld [vmem:[#allocation6 + $0x70] sm:$0xff] }
  0x29   :  { %341 = vmatprep.subr.mxu1 %v215_v21  ;;  %271 = vmatpush1.msra.mxu0 %v150_v22  ;;  %v208_v35 = vld [vmem:[#allocation6 + $0x270] sm:$0xff]  ;;  %v143_v36 = vld [vmem:[#allocation6 + $0x68] sm:$0xff]  ;;  %v142_v38 = vld [vmem:[#allocation6 + $0x60] sm:$0xff] }
  0x2a   :  { %342 = vmatpush1.msra.mxu1 %v214_v23  ;;  %272 = vmatprep.subr.mxu0 %v149_v24  ;;  %v207_v37 = vld [vmem:[#allocation6 + $0x268] sm:$0xff]  ;;  %v206_v39 = vld [vmem:[#allocation6 + $0x260] sm:$0xff]  ;;  %v141_v40 = vld [vmem:[#allocation6 + $0x58] sm:$0xff] }
  0x2b   :  { %343 = vmatprep.subr.mxu1 %v213_v25  ;;  %273 = vmatpush1.msra.mxu0 %v148_v26  ;;  %v205_v41 = vld [vmem:[#allocation6 + $0x258] sm:$0xff]  ;;  %v140_v42 = vld [vmem:[#allocation6 + $0x50] sm:$0xff]  ;;  %v139_v44 = vld [vmem:[#allocation6 + $0x48] sm:$0xff] }
  0x2c   :  { %344 = vmatpush1.msra.mxu1 %v212_v27  ;;  %274 = vmatprep.subr.mxu0 %v147_v28  ;;  %v204_v43 = vld [vmem:[#allocation6 + $0x250] sm:$0xff]  ;;  %v203_v45 = vld [vmem:[#allocation6 + $0x248] sm:$0xff]  ;;  %v138_v46 = vld [vmem:[#allocation6 + $0x40] sm:$0xff] }
  0x2d   :  { %345 = vmatprep.subr.mxu1 %v211_v29  ;;  %275 = vmatpush1.msra.mxu0 %v146_v30  ;;  %v202_v47 = vld [vmem:[#allocation6 + $0x240] sm:$0xff]  ;;  %v137_v48 = vld [vmem:[#allocation6 + $0x38] sm:$0xff]  ;;  %v136_v50 = vld [vmem:[#allocation6 + $0x30] sm:$0xff] }
  0x2e   :  { %346 = vmatpush1.msra.mxu1 %v210_v31  ;;  %276 = vmatprep.subr.mxu0 %v145_v32  ;;  %v201_v49 = vld [vmem:[#allocation6 + $0x238] sm:$0xff]  ;;  %v200_v51 = vld [vmem:[#allocation6 + $0x230] sm:$0xff]  ;;  %v135_v52 = vld [vmem:[#allocation6 + $0x28] sm:$0xff] }
  0x2f   :  { %347 = vmatprep.subr.mxu1 %v209_v33  ;;  %277 = vmatpush1.msra.mxu0 %v144_v34  ;;  %v199_v53 = vld [vmem:[#allocation6 + $0x228] sm:$0xff]  ;;  %v134_v54 = vld [vmem:[#allocation6 + $0x20] sm:$0xff]  ;;  %v133_v56 = vld [vmem:[#allocation6 + $0x18] sm:$0xff] }
  0x30   :  { %348 = vmatpush1.msra.mxu1 %v208_v35  ;;  %278 = vmatprep.subr.mxu0 %v143_v36  ;;  %v198_v55 = vld [vmem:[#allocation6 + $0x220] sm:$0xff]  ;;  %v197_v57 = vld [vmem:[#allocation6 + $0x218] sm:$0xff]  ;;  %v132_v58 = vld [vmem:[#allocation6 + $0x10] sm:$0xff] }
  0x31   :  { %349 = vmatprep.subr.mxu1 %v207_v37  ;;  %279 = vmatpush1.msra.mxu0 %v142_v38  ;;  %v196_v59 = vld [vmem:[#allocation6 + $0x210] sm:$0xff]  ;;  %v131_v60 = vld [vmem:[#allocation6 + $0x8] sm:$0xff]  ;;  %v130_v62 = vld [vmem:[#allocation6] sm:$0xff] }
  0x32   :  { %350 = vmatpush1.msra.mxu1 %v206_v39  ;;  %280 = vmatprep.subr.mxu0 %v141_v40  ;;  %v195_v61 = vld [vmem:[#allocation6 + $0x208] sm:$0xff]  ;;  %v194_v63 = vld [vmem:[#allocation6 + $0x200] sm:$0xff]  ;;  %v193_v0 = vld [vmem:[#allocation6 + $0x1f8] sm:$0xff] }
  0x33   :  { %351 = vmatprep.subr.mxu1 %v205_v41  ;;  %281 = vmatpush1.msra.mxu0 %v140_v42  ;;  %v257_v1 = vld [vmem:[#allocation6 + $0x3f8] sm:$0xff]  ;;  %v192_v2 = vld [vmem:[#allocation6 + $0x1f0] sm:$0xff]  ;;  %v191_v4 = vld [vmem:[#allocation6 + $0x1e8] sm:$0xff] }
  0x34   :  { %352 = vmatpush1.msra.mxu1 %v204_v43  ;;  %282 = vmatprep.subr.mxu0 %v139_v44  ;;  %v256_v3 = vld [vmem:[#allocation6 + $0x3f0] sm:$0xff]  ;;  %v255_v5 = vld [vmem:[#allocation6 + $0x3e8] sm:$0xff]  ;;  %v190_v6 = vld [vmem:[#allocation6 + $0x1e0] sm:$0xff] }
  0x35   :  { %353 = vmatprep.subr.mxu1 %v203_v45  ;;  %283 = vmatpush1.msra.mxu0 %v138_v46  ;;  %v254_v7 = vld [vmem:[#allocation6 + $0x3e0] sm:$0xff]  ;;  %v189_v8 = vld [vmem:[#allocation6 + $0x1d8] sm:$0xff]  ;;  %v188_v10 = vld [vmem:[#allocation6 + $0x1d0] sm:$0xff] }
  0x36   :  { %354 = vmatpush1.msra.mxu1 %v202_v47  ;;  %284 = vmatprep.subr.mxu0 %v137_v48  ;;  %v253_v9 = vld [vmem:[#allocation6 + $0x3d8] sm:$0xff]  ;;  %v252_v11 = vld [vmem:[#allocation6 + $0x3d0] sm:$0xff]  ;;  %v187_v12 = vld [vmem:[#allocation6 + $0x1c8] sm:$0xff] }
  0x37   :  { %355 = vmatprep.subr.mxu1 %v201_v49  ;;  %285 = vmatpush1.msra.mxu0 %v136_v50  ;;  %v251_v13 = vld [vmem:[#allocation6 + $0x3c8] sm:$0xff]  ;;  %v186_v14 = vld [vmem:[#allocation6 + $0x1c0] sm:$0xff]  ;;  %v185_v16 = vld [vmem:[#allocation6 + $0x1b8] sm:$0xff] }
  0x38   :  { %356 = vmatpush1.msra.mxu1 %v200_v51  ;;  %286 = vmatprep.subr.mxu0 %v135_v52  ;;  %v250_v15 = vld [vmem:[#allocation6 + $0x3c0] sm:$0xff]  ;;  %v249_v17 = vld [vmem:[#allocation6 + $0x3b8] sm:$0xff]  ;;  %v184_v18 = vld [vmem:[#allocation6 + $0x1b0] sm:$0xff] }
  0x39   :  { %357 = vmatprep.subr.mxu1 %v199_v53  ;;  %287 = vmatpush1.msra.mxu0 %v134_v54  ;;  %v248_v19 = vld [vmem:[#allocation6 + $0x3b0] sm:$0xff]  ;;  %v183_v20 = vld [vmem:[#allocation6 + $0x1a8] sm:$0xff]  ;;  %v182_v22 = vld [vmem:[#allocation6 + $0x1a0] sm:$0xff] }
  0x3a   :  { %358 = vmatpush1.msra.mxu1 %v198_v55  ;;  %288 = vmatprep.subr.mxu0 %v133_v56  ;;  %v247_v21 = vld [vmem:[#allocation6 + $0x3a8] sm:$0xff]  ;;  %v246_v23 = vld [vmem:[#allocation6 + $0x3a0] sm:$0xff]  ;;  %v181_v24 = vld [vmem:[#allocation6 + $0x198] sm:$0xff] }
  0x3b   :  { %359 = vmatprep.subr.mxu1 %v197_v57  ;;  %289 = vmatpush1.msra.mxu0 %v132_v58  ;;  %v245_v25 = vld [vmem:[#allocation6 + $0x398] sm:$0xff]  ;;  %v604_v26 = vld [vmem:[#allocation3] sm:$0xff]  ;;  %v179_v34 = vld [vmem:[#allocation6 + $0x188] sm:$0xff] }
  0x3c   :  { %360 = vmatpush1.msra.mxu1 %v196_v59  ;;  %290 = vmatprep.subr.mxu0 %v131_v60  ;;  %v606_v27 = vld [vmem:[#allocation3 + $0x8] sm:$0xff]  ;;  %v180_v28 = vld [vmem:[#allocation6 + $0x190] sm:$0xff]  ;;  %v48_v30 = vcombine.high %v604_v26, %v604_v26  ;;  %v53_v32 = vsel %vm52_vm0, %v604_v26, 0.0  ;;  %v243_v35 = vld [vmem:[#allocation6 + $0x388] sm:$0xff]  ;;  %v85_v38 = vsel %vm52_vm0, %v604_v26, -inf }
  0x3d   :  { %361 = vmatprep.subr.mxu1 %v195_v61  ;;  %291 = vmatpush1.msra.mxu0 %v130_v62  ;;  %v244_v29 = vld [vmem:[#allocation6 + $0x390] sm:$0xff]  ;;  %v49_v31 = vcombine.high %v606_v27, %v606_v27  ;;  %v67_v33 = vsel %vm52_vm0, %v606_v27, 0.0  ;;  %v54_v36 = vrot.slane %v53_v32, 4  ;;  %v99_v39 = vsel %vm52_vm0, %v606_v27, -inf  ;;  %v178_v40 = vld [vmem:[#allocation6 + $0x180] sm:$0xff]  ;;  %v177_v46 = vld [vmem:[#allocation6 + $0x178] sm:$0xff] }
  0x3e   :  { %362 = vmatpush1.msra.mxu1 %v194_v63  ;;  %292 = vmatprep.subr.mxu0 %v193_v0  ;;  %v68_v37 = vrot.slane %v67_v33, 4  ;;  %v242_v41 = vld [vmem:[#allocation6 + $0x380] sm:$0xff]  ;;  %v60_v42 = vsel %vm52_vm0, %v48_v30, 0.0  ;;  %v92_v44 = vsel %vm52_vm0, %v48_v30, -inf  ;;  %v241_v47 = vld [vmem:[#allocation6 + $0x378] sm:$0xff]  ;;  %v176_v52 = vld [vmem:[#allocation6 + $0x170] sm:$0xff] }
  0x3f   :  { %363 = vmatprep.subr.mxu1 %v257_v1  ;;  %293 = vmatpush2.msra.mxu0 %v192_v2  ;;  %v74_v43 = vsel %vm52_vm0, %v49_v31, 0.0  ;;  %v106_v45 = vsel %vm52_vm0, %v49_v31, -inf  ;;  %v61_v48 = vrot.slane %v60_v42, 4  ;;  %v93_v50 = vrot.slane %v92_v44, 4  ;;  %v240_v53 = vld [vmem:[#allocation6 + $0x370] sm:$0xff]  ;;  %v175_v58 = vld [vmem:[#allocation6 + $0x168] sm:$0xff] }
  0x40   :  { %364 = vmatpush2.msra.mxu1 %v256_v3  ;;  %294 = vmatprep.subr.mxu0 %v191_v4  ;;  %v75_v49 = vrot.slane %v74_v43, 4  ;;  %v107_v51 = vrot.slane %v106_v45, 4  ;;  %v55_v54 = vadd.f32 %v54_v36, %v53_v32  ;;  %v69_v55 = vadd.f32 %v68_v37, %v67_v33  ;;  %v239_v59 = vld [vmem:[#allocation6 + $0x368] sm:$0xff]  ;;  %v174_v63 = vld [vmem:[#allocation6 + $0x160] sm:$0xff]  ;;  %v169_v31 = vld [vmem:[#allocation6 + $0x138] sm:$0xff] }
  0x41   :  { %365 = vmatprep.subr.mxu1 %v255_v5  ;;  %295 = vmatpush2.msra.mxu0 %v190_v6  ;;  %v86_v56 = vrot.slane %v85_v38, 4  ;;  %v100_v57 = vrot.slane %v99_v39, 4  ;;  %v62_v60 = vadd.f32 %v61_v48, %v60_v42  ;;  %v94_v62 = vmax.f32 %v92_v44, %v93_v50  ;;  %v238_v0 = vld [vmem:[#allocation6 + $0x360] sm:$0xff]  ;;  %v173_v5 = vld [vmem:[#allocation6 + $0x158] sm:$0xff]  ;;  %v168_v37 = vld [vmem:[#allocation6 + $0x130] sm:$0xff] }
  0x42   :  { %366 = vmatpush2.msra.mxu1 %v254_v7  ;;  %296 = vmatprep.subr.mxu0 %v189_v8  ;;  %v76_v61 = vadd.f32 %v75_v49, %v74_v43  ;;  %v108_v1 = vmax.f32 %v106_v45, %v107_v51  ;;  %v56_v2 = vrot.slane %v55_v54, 2  ;;  %v70_v3 = vrot.slane %v69_v55, 2  ;;  %v237_v6 = vld [vmem:[#allocation6 + $0x358] sm:$0xff]  ;;  %v167_v43 = vld [vmem:[#allocation6 + $0x128] sm:$0xff]  ;;  %v166_v48 = vld [vmem:[#allocation6 + $0x120] sm:$0xff] }
  0x43   :  { %367 = vmatprep.subr.mxu1 %v253_v9  ;;  %297 = vmatpush2.msra.mxu0 %v188_v10  ;;  %v87_v4 = vmax.f32 %v85_v38, %v86_v56  ;;  %v63_v7 = vrot.slane %v62_v60, 2  ;;  %v95_v9 = vrot.slane %v94_v62, 2  ;;  %v101_v10 = vmax.f32 %v99_v39, %v100_v57  ;;  %v233_v32 = vld [vmem:[#allocation6 + $0x338] sm:$0xff]  ;;  %v232_v38 = vld [vmem:[#allocation6 + $0x330] sm:$0xff]  ;;  %v231_v44 = vld [vmem:[#allocation6 + $0x328] sm:$0xff] }
  0x44   :  { %368 = vmatpush2.msra.mxu1 %v252_v11  ;;  %298 = vmatprep.subr.mxu0 %v187_v12  ;;  %v77_v8 = vrot.slane %v76_v61, 2  ;;  %v172_v11 = vld [vmem:[#allocation6 + $0x150] sm:$0xff]  ;;  %v230_v49 = vld [vmem:[#allocation6 + $0x320] sm:$0xff]  ;;  %v165_v50 = vld [vmem:[#allocation6 + $0x118] sm:$0xff] }
  0x45   :  { %369 = vmatprep.subr.mxu1 %v251_v13  ;;  %299 = vmatpush2.msra.mxu0 %v186_v14  ;;  %v236_v12 = vld [vmem:[#allocation6 + $0x350] sm:$0xff]  ;;  %v109_v13 = vrot.slane %v108_v1, 2  ;;  %v57_v14 = vadd.f32 %v56_v2, %v55_v54  ;;  %v229_v51 = vld [vmem:[#allocation6 + $0x318] sm:$0xff]  ;;  %v226_v2 = vld [vmem:[#allocation6 + $0x300] sm:$0xff] }
  0x46   :  { %370 = vmatpush2.msra.mxu1 %v250_v15  ;;  %300 = vmatprep.subr.mxu0 %v185_v16  ;;  %v71_v15 = vadd.f32 %v70_v3, %v69_v55  ;;  %v88_v16 = vrot.slane %v87_v4, 2  ;;  %v164_v56 = vld [vmem:[#allocation6 + $0x110] sm:$0xff] }
  0x47   :  { %371 = vmatprep.subr.mxu1 %v249_v17  ;;  %301 = vmatpush2.msra.mxu0 %v184_v18  ;;  %v171_v17 = vld [vmem:[#allocation6 + $0x148] sm:$0xff]  ;;  %v228_v57 = vld [vmem:[#allocation6 + $0x310] sm:$0xff] }
  0x48   :  { %372 = vmatpush2.msra.mxu1 %v248_v19  ;;  %302 = vmatprep.subr.mxu0 %v183_v20  ;;  %v235_v18 = vld [vmem:[#allocation6 + $0x348] sm:$0xff]  ;;  %v64_v19 = vadd.f32 %v63_v7, %v62_v60  ;;  %v78_v20 = vadd.f32 %v77_v8, %v76_v61  ;;  %v89_v30 = vmax.f32 %v87_v4, %v88_v16 }
  0x49   :  { %373 = vmatprep.subr.mxu1 %v247_v21  ;;  %303 = vmatpush2.msra.mxu0 %v182_v22  ;;  %v96_v21 = vmax.f32 %v94_v62, %v95_v9  ;;  %v102_v22 = vrot.slane %v101_v10, 2  ;;  %v163_v62 = vld [vmem:[#allocation6 + $0x108] sm:$0xff] }
  0x4a   :  { %374 = vmatpush2.msra.mxu1 %v246_v23  ;;  %304 = vmatprep.subr.mxu0 %v181_v24  ;;  %v170_v23 = vld [vmem:[#allocation6 + $0x140] sm:$0xff]  ;;  %v65_v33 = vrot.slane %v64_v19, 1  ;;  %v90_v42 = vrot.slane %v89_v30, 1 }
  0x4b   :  { %375 = vmatprep.subr.mxu1 %v245_v25  ;;  %305 = vmatpush2.msra.mxu0 %v180_v28  ;;  %v234_v24 = vld [vmem:[#allocation6 + $0x340] sm:$0xff]  ;;  %v110_v25 = vmax.f32 %v108_v1, %v109_v13  ;;  %v58_v28 = vrot.slane %v57_v14, 1  ;;  %v103_v36 = vmax.f32 %v101_v10, %v102_v22 }
  0x4c   :  { %376 = vmatpush2.msra.mxu1 %v244_v29  ;;  %306 = vmatprep.subr.mxu0 %v179_v34  ;;  %v72_v29 = vrot.slane %v71_v15, 1  ;;  %v79_v34 = vrot.slane %v78_v20, 1  ;;  %v66_v45 = vadd.f32 %v65_v33, %v64_v19  ;;  %v91_v60 = vmax.f32 %v89_v30, %v90_v42 }
  0x4d   :  { %377 = vmatprep.subr.mxu1 %v243_v35  ;;  %307 = vmatpush2.msra.mxu0 %v178_v40  ;;  %v97_v35 = vrot.slane %v96_v21, 1  ;;  %v111_v39 = vrot.slane %v110_v25, 1  ;;  %v59_v40 = vadd.f32 %v58_v28, %v57_v14 }
  0x4e   :  { %378 = vmatpush2.msra.mxu1 %v242_v41  ;;  %308 = vmatprep.subr.mxu0 %v177_v46  ;;  %v73_v41 = vadd.f32 %v72_v29, %v71_v15  ;;  %v80_v46 = vadd.f32 %v79_v34, %v78_v20 }
  0x4f   :  { %379 = vmatprep.subr.mxu1 %v241_v47  ;;  %309 = vmatpush2.msra.mxu0 %v176_v52  ;;  %v104_v47 = vrot.slane %v103_v36, 1  ;;  %v82_v52 = vmul.f32 0.25, %v66_v45  ;;  %v98_v54 = vmax.f32 %v96_v21, %v97_v35  ;;  %v112_v55 = vmax.f32 %v110_v25, %v111_v39 }
  0x50   :  { %380 = vmatpush2.msra.mxu1 %v240_v53  ;;  %310 = vmatprep.subr.mxu0 %v175_v58  ;;  %v84_v53 = vmul.f32 0.25, %v80_v46  ;;  %v81_v58 = vmul.f32 0.25, %v59_v40  ;;  %v573_v21 = vmov 1966171168  }
  0x51   :  { %381 = vmatprep.subr.mxu1 %v239_v59  ;;  %311 = vmatpush2.msra.mxu0 %v174_v63  ;;  %v83_v59 = vmul.f32 0.25, %v73_v41  ;;  %v105_v61 = vmax.f32 %v103_v36, %v104_v47  ;;  %v227_v63 = vld [vmem:[#allocation6 + $0x308] sm:$0xff]  ;;  %v127_v3 = vsel %vm117_vm1, %v112_v55, %v98_v54  ;;  %v418_v22 = vunpack.c.l.s4 %v573_v21 }
  0x52   :  { %382 = vmatpush2.msra.mxu1 %v238_v0  ;;  %312 = vmatprep.subr.mxu0 %v173_v5  ;;  %v162_v0 = vld [vmem:[#allocation6 + $0x100] sm:$0xff]  ;;  %v119_v1 = vsel %vm117_vm1, %v84_v53, %v82_v52 }
  0x53   :  { %383 = vmatprep.subr.mxu1 %v237_v6  ;;  %313 = vmatpush2.msra.mxu0 %v172_v11  ;;  %v118_v4 = vsel %vm117_vm1, %v83_v59, %v81_v58  ;;  %v126_v5 = vsel %vm117_vm1, %v105_v61, %v91_v60  ;;  %v259_v6 = vstv %s639_s0  ;;  %s574_s0 = smov [#allocation8]  }
  0x54   :  { %384 = vmatpush2.msra.mxu1 %v236_v12  ;;  %314 = vmatprep.subr.mxu0 %v171_v17  ;;  %s468_s26 = sshll.u32 %s574_s0, 4  ;;  %s469_s26 = int_to_ptr.vmem [resolvable:$true] %s468_s26 }
  0x55   :  { %385 = vmatprep.subr.mxu1 %v235_v18  ;;  %315 = vmatpush2.msra.mxu0 %v170_v23  ;;  %v420_v23 = vlaneseq  ;;  %s541_s27 = scalar_lea.vmem %s469_s26, 256  ;;  %p546_p11 = scmp.lt.s32.totalorder %s469_s26, %s469_s26 }
  0x56   :  { %386 = vmatpush2.msra.mxu1 %v234_v24  ;;  %316 = vmatprep.subr.mxu0 %v169_v31  ;;  %v419_v24 = vunpack.c.0.s8 %v418_v22  ;;  %p542_p10 = scmp.ne.s32.totalorder %s469_s26, %s541_s27  ;;  %p547_p12 = scmp.lt.s32.totalorder %s541_s27, %s541_s27 }
  0x57   :  { %387 = vmatprep.subr.mxu1 %v233_v32  ;;  %317 = vmatpush2.msra.mxu0 %v168_v37  ;;  %v421_v25 = vshrl.u32 %v420_v23, 7 }
  0x58   :  { %388 = vmatpush2.msra.mxu1 %v232_v38  ;;  %318 = vmatprep.subr.mxu0 %v167_v43  ;;  %p548_p13 = por %p547_p12, %p546_p11 }
  0x59   :  { %389 = vmatprep.subr.mxu1 %v231_v44  ;;  %319 = vmatpush2.msra.mxu0 %v166_v48  ;;  %v422_v29 = vsub.s32 %v419_v24, %v421_v25  ;;  %v441_v33 = vsub.s32 0, %v421_v25  ;;  %v445_v34 = vsub.s32 1, %v421_v25 }
  0x5a   :  { %390 = vmatpush2.msra.mxu1 %v230_v49  ;;  %320 = vmatprep.subr.mxu0 %v165_v50  ;;  %p549_p0 = pnand %p548_p13, %p542_p10 }
  0x5b   :  { %391 = vmatprep.subr.mxu1 %v229_v51  ;;  %321 = vmatpush2.msra.mxu0 %v164_v56 }
  0x5c   :  { %392 = vmatpush2.msra.mxu1 %v228_v57  ;;  %322 = vmatprep.subr.mxu0 %v163_v62 }
  0x5d   :  { %393 = vmatprep.subr.mxu1 %v227_v63  ;;  %323 = vmatpush2.msra.mxu0 %v162_v0 }
  0x5e   :  { %324 = vmatprep.mubr.f32.mxu0 %v119_v1  ;;  %394 = vmatpush2.msra.mxu1 %v226_v2 }
  0x5f   :  { %395 = vmatprep.mubr.f32.mxu1 %v127_v3  ;;  %325 = vmatmul.mubr.f32.vlgmr.msra.gmra.mxu0 %v118_v4 }
  0x60   :  { %396 = vmatmul.mubr.f32.vlgmr.msra.gmra.mxu1 %v126_v5 }
 0x11f   :  { %v326_v7 = vpop.f32.mrf.mxu0 }
 0x120   :  { %v397_v8 = vpop.f32.mrf.mxu1  ;;  %v327_v9 = vadd.f32 %v326_v7, %v259_v6 }
 0x121   :  { %v328_v10 = vpop.f32.mrf.mxu0 }
 0x122   :  { %v398_v11 = vadd.f32 %v397_v8, %v327_v9  ;;  %v329_v12 = vadd.f32 %v328_v10, %v259_v6  ;;  %v399_v13 = vpop.f32.mrf.mxu1 }
 0x124   :  { %v481_v14 = vmul.f32 -1.442695, %v398_v11  ;;  %v400_v15 = vadd.f32 %v399_v13, %v329_v12 }
 0x126   :  { %493 = vpow2.f32 %v481_v14  ;;  %v482_v16 = vmul.f32 -1.442695, %v400_v15 }
 0x128   :  { %495 = vpow2.f32 %v482_v16 }
 0x133   :  { %v494_v17 = vpop.eup %493 }
 0x134   :  { %v408_v18 = vadd.f32 1.0, %v494_v17 }
 0x135   :  { %v496_v19 = vpop.eup %495 }
 0x136   :  { %v409_v20 = vadd.f32 1.0, %v496_v19  ;;  %497 = vrcp.f32 %v408_v18 }
 0x138   :  { %499 = vrcp.f32 %v409_v20 }
 0x143   :  { %v498_v28 = vpop.eup %497 }
 0x145   :  { %v500_v30 = vpop.eup %499 }
 0x146   :  { %v416_v31 = vcombine.low %v498_v28, %v500_v30 }
 0x148   :  { %v423_v32 = vrot.slane %v416_v31, %v422_v29 }
 0x14a   :  { %v424_v35 = vcombine.high %v423_v32, %v423_v32  ;;  %v431_v36 = vrot.slane %v423_v32, %v422_v29 }
 0x14c   :  { %v438_v37 = vrot.slane %v424_v35, %v422_v29  ;;  %v442_v38 = vrot.slane %v431_v36, %v441_v33  ;;  %v446_v39 = vrot.slane %v431_v36, %v445_v34 }
 0x14e   :  { %v450_v40 = vrot.slane %v438_v37, %v441_v33  ;;  %v454_v41 = vrot.slane %v438_v37, %v445_v34  ;;  %v455_v42 = vcombine.low %v442_v38, %v446_v39 }
 0x150   :  { %v456_v43 = vcombine.low %v450_v40, %v454_v41  ;;  %v459_v44 = vmul.f32 %v455_v42, %v604_v26 }
 0x152   :  { %v460_v45 = vmul.f32 %v456_v43, %v606_v27  ;;  %461 = vst [vmem:[#allocation8] sm:$0xff] %v459_v44 }
 0x154   :  { %462 = vst [vmem:[#allocation8 + $0x8] sm:$0xff] %v460_v45 }
 0x155   :  { %552 = shalt.err (!%p549_p0)
}
 0x156   :  { %474 = dma.vmem_to_hbm [thread:$0]  %s469_s26, 256, %s642_s3, [#allocation5], %s568_s15, %s568_s15, %s569_s16  }
 0x157   :  { %565 = dma.done.wait [#allocation5], 256  }
 0x158   :  { %566 = vsyncadd [#allocation5], 4294967040 }
 0x159   :  { %478 = vsyncpa [#allocation4], 1 }
 0x15a   :  { %479 = vsyncpa [#allocation7], 1 }
 0x15b   :  { %480 = vsyncpa [#allocation5], 1 }

</bundles_post_ra>
